<compile_context>
chip_gen: v7x
topology: tpu7x:2x2x1
jax: 0.10.0
libtpu: 0.0.40
codegen_flags: <defaults>
</compile_context>

<pallas_src>
import numpy as np
import jax
import jax.numpy as jnp
from jax import lax
from jax.experimental import pallas as pl
from jax.experimental.pallas import tpu as pltpu


_LANES = 128
_TIME_TILE_MAX = 8192           # 64 lane-chunks/step: bounds the static unroll & compile time
_ROW_TILE_MAX = 128             # keeps the (row_tile, 128) f32 accumulators register friendly
_VMEM_LIMIT_BYTES = 48 * 1024 * 1024   # explicit scoped-VMEM cap (fits v7x's 64 MiB physical)


def _round_up(a, b):
    return ((a + b - 1) // b) * b


def _pick_tiles(R, T):
    time_tile = min(_round_up(T, _LANES), _TIME_TILE_MAX)
    if R <= 16:
        row_tile = R                                   # block dim == full array dim (legal, no waste)
    else:
        row_tile = min(_ROW_TILE_MAX, (R // 16) * 16)  # (16,128)-aligned -> bf16 safe
    return row_tile, time_tile


def _make_crest_stats_call(R, T, dtype, row_tile, time_tile, n_splits):
    """pallas_call computing per-row running max(x^2) and sum(x^2) for input & target."""
    n_row_blocks = pl.cdiv(R, row_tile)
    n_tb = pl.cdiv(T, time_tile)            # global number of time blocks
    jps = pl.cdiv(n_tb, n_splits)           # time blocks handled per split
    rem = T % time_tile                     # valid columns of the (ragged) last time block
    has_dead = n_splits * jps > n_tb        # padding steps in the last split
    nk = time_tile // _LANES
    grid = (n_splits, n_row_blocks, jps)

    def in_index_map(s, i, j):
        g = s * jps + j
        if has_dead:
            g = jnp.minimum(g, n_tb - 1)    # dead steps re-read the last block and do no work
        return (i, g)

    def out_index_map(s, i, j):
        return (s, i, 0)

    data_spec = pl.BlockSpec((row_tile, time_tile), in_index_map)
    stat_spec = pl.BlockSpec((None, row_tile, _LANES), out_index_map)
    stat_shape = jax.ShapeDtypeStruct((n_splits, R, _LANES), jnp.float32)

    def kernel(xi_ref, xt_ref, pi_ref, si_ref, pt_ref, st_ref):
        s = pl.program_id(0)
        j = pl.program_id(2)
        g = s * jps + j                     # global time-block index

        @pl.when(j == 0)
        def _init():
            zeros = jnp.zeros((row_tile, _LANES), jnp.float32)
            pi_ref[...] = zeros
            si_ref[...] = zeros
            pt_ref[...] = zeros
            st_ref[...] = zeros

        def accum_one(x_ref, p_ref, sum_ref, n_full, tail):
            """Fold 128-wide lane chunks into per-lane running max / sum (pure VPU)."""
            p = p_ref[...]
            ssum = sum_ref[...]
            for k in range(n_full):                      # static, lane-aligned slices
                c = x_ref[:, k * _LANES:(k + 1) * _LANES].astype(jnp.float32)
                sq = c * c
                p = jnp.maximum(p, sq)
                ssum = ssum + sq
            if tail > 0:                                 # ragged final chunk: mask stale lanes
                lo = n_full * _LANES
                c = x_ref[:, lo:lo + _LANES].astype(jnp.float32)
                sq = c * c
                valid = lax.broadcasted_iota(jnp.int32, sq.shape, 1) < tail
                sq = jnp.where(valid, sq, 0.0)
                p = jnp.maximum(p, sq)
                ssum = ssum + sq
            p_ref[...] = p
            sum_ref[...] = ssum

        def accum_block(valid_cols):
            n_full, tail = valid_cols // _LANES, valid_cols % _LANES
            accum_one(xi_ref, pi_ref, si_ref, n_full, tail)
            accum_one(xt_ref, pt_ref, st_ref, n_full, tail)

        if rem == 0 and not has_dead:
            accum_block(time_tile)
        else:
            n_full_blocks = n_tb - (1 if rem else 0)
            if n_full_blocks > 0:
                @pl.when(g < n_full_blocks)
                def _full():
                    accum_block(time_tile)
            if rem:
                @pl.when(g == n_tb - 1)
                def _ragged():
                    accum_block(rem)
            # g >= n_tb (dead padding steps of the last split): nothing to do.

        _ = nk  # (documentational: nk == time_tile // 128 bounds the unroll above)

    return pl.pallas_call(
        kernel,
        out_shape=(stat_shape, stat_shape, stat_shape, stat_shape),
        grid=grid,
        in_specs=[data_spec, data_spec],
        out_specs=(stat_spec, stat_spec, stat_spec, stat_spec),
        compiler_params=pltpu.CompilerParams(
            dimension_semantics=("parallel", "parallel", "arbitrary"),
            vmem_limit_bytes=_VMEM_LIMIT_BYTES,
        ),
    )


def _crest_factor_error_impl(input_wave, target_wave):
    assert input_wave.shape == target_wave.shape, "input/target shapes must match"

    # Keep bf16 in HBM (halves read traffic); everything else is streamed as f32.
    if input_wave.dtype == jnp.bfloat16 and target_wave.dtype == jnp.bfloat16:
        dtype = jnp.bfloat16
    else:
        dtype = jnp.float32

    T = input_wave.shape[-1]
    x_in = jnp.asarray(input_wave, dtype).reshape(-1, T)
    x_tg = jnp.asarray(target_wave, dtype).reshape(-1, T)
    R = x_in.shape[0]

    row_tile, time_tile = _pick_tiles(R, T)
    n_row_blocks = pl.cdiv(R, row_tile)
    n_tb = pl.cdiv(T, time_tile)
    # v7x has 2 TensorCores: if the batch fits one row block, split the time range so the
    # parallel grid axes still expose >= 2 blocks (negligible overhead on v5e/v6e).
    n_splits = 2 if (n_row_blocks < 2 and n_tb >= 2) else 1

    call = _make_crest_stats_call(R, T, dtype, row_tile, time_tile, n_splits)
    p_in, s_in, p_tg, s_tg = call(x_in, x_tg)          # each: (n_splits, R, 128) f32

    def crest_factor(peak_sq, sum_sq):
        peak_sq = jnp.max(peak_sq, axis=(0, 2))        # combine splits + 128 lanes -> (R,)
        sum_sq = jnp.sum(sum_sq, axis=(0, 2))          # (R,)
        peak = jnp.sqrt(peak_sq)                       # == max|x|  (sq-reuse trick)
        rms = jnp.sqrt(sum_sq / T)                     # mean over the REAL time length
        return 20.0 * jnp.log(peak / jnp.maximum(rms, 1e-8))   # torch.log == natural log

    cf_in = crest_factor(p_in, s_in)
    cf_tg = crest_factor(p_tg, s_tg)
    return jnp.mean(jnp.abs(cf_in - cf_tg))            # F.l1_loss(..., reduction='mean')


_crest_factor_error_jit = jax.jit(_crest_factor_error_impl)


def crest_factor_error(input_wave, target_wave):
    """Matches CrestFactorError().forward(input, target); returns a 0-d JAX array."""
    return _crest_factor_error_jit(input_wave, target_wave)


def _crest_factor_error_ref(input_wave, target_wave):
    """Pure-JAX reference mirroring the PyTorch module (for correctness checks)."""
    def cf(x):
        x = jnp.asarray(x, jnp.float32)
        peak = jnp.max(jnp.abs(x), axis=-1)
        rms = jnp.sqrt(jnp.mean(x * x, axis=-1))
        return 20.0 * jnp.log(peak / jnp.maximum(rms, 1e-8))
    return jnp.mean(jnp.abs(cf(input_wave) - cf(target_wave)))


def _check(inp, tgt, tol):
    loss = jax.block_until_ready(crest_factor_error(inp, tgt))
    ref = jax.block_until_ready(_crest_factor_error_ref(inp, tgt))
    assert jnp.isfinite(loss)
    np.testing.assert_allclose(float(loss), float(ref), rtol=tol, atol=tol)


if __name__ == "__main__":
    key = jax.random.PRNGKey(0)
    k1, k2, k3, k4, k5, k6, k7, k8 = jax.random.split(key, 8)

    # Main demo: batch=2 waveforms of 1024 samples (aligned shapes, single block).
    _check(jax.random.normal(k1, (2, 1024), dtype=jnp.float32),
           jax.random.normal(k2, (2, 1024), dtype=jnp.float32), tol=1e-3)

    # Ragged rows and time (3, 1000): exercises the in-kernel mask of the partial block.
    _check(jax.random.normal(k3, (3, 1000), dtype=jnp.float32),
           jax.random.normal(k4, (3, 1000), dtype=jnp.float32), tol=1e-3)

    # Long waveform (2, 20000): multiple time blocks, accumulation across the grid,
    # 2-way time split (megacore path) incl. a dead padding step, plus a ragged tail.
    _check(jax.random.normal(k5, (2, 20000), dtype=jnp.float32),
           jax.random.normal(k6, (2, 20000), dtype=jnp.float32), tol=1e-3)

    # bf16 waveforms stream natively (no HBM upcast copy) and are widened in-kernel.
    _check(jax.random.normal(k7, (16, 512), dtype=jnp.float32).astype(jnp.bfloat16),
           jax.random.normal(k8, (16, 512), dtype=jnp.float32).astype(jnp.bfloat16), tol=2e-3)

    print("KERNEL_OK")
</pallas_src>

<mosaic_0001>
module attributes {stable_mosaic.version = 11 : i64} {
  func.func @kernel(%arg0: i32, %arg1: i32, %arg2: i32, %arg3: memref<2x1024xf32, #tpu.memory_space<vmem>>, %arg4: memref<2x1024xf32, #tpu.memory_space<vmem>>, %arg5: memref<1x2x128xf32, #tpu.memory_space<vmem>>, %arg6: memref<1x2x128xf32, #tpu.memory_space<vmem>>, %arg7: memref<1x2x128xf32, #tpu.memory_space<vmem>>, %arg8: memref<1x2x128xf32, #tpu.memory_space<vmem>>) attributes {dimension_semantics = [#tpu.dimension_semantics<parallel>, #tpu.dimension_semantics<parallel>, #tpu.dimension_semantics<arbitrary>], iteration_bounds = array<i64: 1, 1, 1>, scalar_prefetch = 0 : i64, scratch_operands = 0 : i64, tpu.core_type = #tpu.core_type<tc>, window_params = [{transform_indices = @transform_0, window_bounds = array<i64: 2, 1024>}, {transform_indices = @transform_1, window_bounds = array<i64: 2, 1024>}, {transform_indices = @transform_2, window_bounds = array<i64: 1, 2, 128>}, {transform_indices = @transform_3, window_bounds = array<i64: 1, 2, 128>}, {transform_indices = @transform_4, window_bounds = array<i64: 1, 2, 128>}, {transform_indices = @transform_5, window_bounds = array<i64: 1, 2, 128>}]} {
    %c0_i32 = arith.constant 0 : i32
    %0 = arith.cmpi eq, %arg2, %c0_i32 : i32
    %1 = arith.extui %0 : i1 to i32
    %c0_i32_0 = arith.constant 0 : i32
    %2 = arith.cmpi ne, %1, %c0_i32_0 : i32
    scf.if %2 {
      %cst = arith.constant 0.000000e+00 : f32
      %87 = vector.broadcast %cst : f32 to vector<2x128xf32>
      %c0_49 = arith.constant 0 : index
      %c0_50 = arith.constant 0 : index
      %c0_51 = arith.constant 0 : index
      %88 = vector.load %arg5[%c0_49, %c0_50, %c0_51] : memref<1x2x128xf32, #tpu.memory_space<vmem>>, vector<1x2x128xf32>
      %89 = vector.shape_cast %88 : vector<1x2x128xf32> to vector<2x128xf32>
      %90 = vector.shape_cast %87 : vector<2x128xf32> to vector<1x2x128xf32>
      tpu.vector_store %arg5[%c0_49, %c0_50, %c0_51], %90 {strides = array<i32>} : memref<1x2x128xf32, #tpu.memory_space<vmem>>, vector<1x2x128xf32>,
      %c0_52 = arith.constant 0 : index
      %c0_53 = arith.constant 0 : index
      %c0_54 = arith.constant 0 : index
      %91 = vector.load %arg6[%c0_52, %c0_53, %c0_54] : memref<1x2x128xf32, #tpu.memory_space<vmem>>, vector<1x2x128xf32>
      %92 = vector.shape_cast %91 : vector<1x2x128xf32> to vector<2x128xf32>
      %93 = vector.shape_cast %87 : vector<2x128xf32> to vector<1x2x128xf32>
      tpu.vector_store %arg6[%c0_52, %c0_53, %c0_54], %93 {strides = array<i32>} : memref<1x2x128xf32, #tpu.memory_space<vmem>>, vector<1x2x128xf32>,
      %c0_55 = arith.constant 0 : index
      %c0_56 = arith.constant 0 : index
      %c0_57 = arith.constant 0 : index
      %94 = vector.load %arg7[%c0_55, %c0_56, %c0_57] : memref<1x2x128xf32, #tpu.memory_space<vmem>>, vector<1x2x128xf32>
      %95 = vector.shape_cast %94 : vector<1x2x128xf32> to vector<2x128xf32>
      %96 = vector.shape_cast %87 : vector<2x128xf32> to vector<1x2x128xf32>
      tpu.vector_store %arg7[%c0_55, %c0_56, %c0_57], %96 {strides = array<i32>} : memref<1x2x128xf32, #tpu.memory_space<vmem>>, vector<1x2x128xf32>,
      %c0_58 = arith.constant 0 : index
      %c0_59 = arith.constant 0 : index
      %c0_60 = arith.constant 0 : index
      %97 = vector.load %arg8[%c0_58, %c0_59, %c0_60] : memref<1x2x128xf32, #tpu.memory_space<vmem>>, vector<1x2x128xf32>
      %98 = vector.shape_cast %97 : vector<1x2x128xf32> to vector<2x128xf32>
      %99 = vector.shape_cast %87 : vector<2x128xf32> to vector<1x2x128xf32>
      tpu.vector_store %arg8[%c0_58, %c0_59, %c0_60], %99 {strides = array<i32>} : memref<1x2x128xf32, #tpu.memory_space<vmem>>, vector<1x2x128xf32>,
    } else {
    }
    %c0 = arith.constant 0 : index
    %c0_1 = arith.constant 0 : index
    %c0_2 = arith.constant 0 : index
    %3 = vector.load %arg5[%c0, %c0_1, %c0_2] : memref<1x2x128xf32, #tpu.memory_space<vmem>>, vector<1x2x128xf32>
    %4 = vector.shape_cast %3 : vector<1x2x128xf32> to vector<2x128xf32>
    %c0_3 = arith.constant 0 : index
    %c0_4 = arith.constant 0 : index
    %c0_5 = arith.constant 0 : index
    %5 = vector.load %arg6[%c0_3, %c0_4, %c0_5] : memref<1x2x128xf32, #tpu.memory_space<vmem>>, vector<1x2x128xf32>
    %6 = vector.shape_cast %5 : vector<1x2x128xf32> to vector<2x128xf32>
    %c0_6 = arith.constant 0 : index
    %c0_7 = arith.constant 0 : index
    %7 = vector.load %arg3[%c0_6, %c0_7] : memref<2x1024xf32, #tpu.memory_space<vmem>>, vector<2x128xf32>
    %8 = arith.mulf %7, %7 : vector<2x128xf32>
    %9 = arith.maximumf %4, %8 : vector<2x128xf32>
    %10 = arith.addf %6, %8 : vector<2x128xf32>
    %c0_8 = arith.constant 0 : index
    %c128 = arith.constant 128 : index
    %11 = vector.load %arg3[%c0_8, %c128] : memref<2x1024xf32, #tpu.memory_space<vmem>>, vector<2x128xf32>
    %12 = arith.mulf %11, %11 : vector<2x128xf32>
    %13 = arith.maximumf %9, %12 : vector<2x128xf32>
    %14 = arith.addf %10, %12 : vector<2x128xf32>
    %c0_9 = arith.constant 0 : index
    %c256 = arith.constant 256 : index
    %15 = vector.load %arg3[%c0_9, %c256] : memref<2x1024xf32, #tpu.memory_space<vmem>>, vector<2x128xf32>
    %16 = arith.mulf %15, %15 : vector<2x128xf32>
    %17 = arith.maximumf %13, %16 : vector<2x128xf32>
    %18 = arith.addf %14, %16 : vector<2x128xf32>
    %c0_10 = arith.constant 0 : index
    %c384 = arith.constant 384 : index
    %19 = vector.load %arg3[%c0_10, %c384] : memref<2x1024xf32, #tpu.memory_space<vmem>>, vector<2x128xf32>
    %20 = arith.mulf %19, %19 : vector<2x128xf32>
    %21 = arith.maximumf %17, %20 : vector<2x128xf32>
    %22 = arith.addf %18, %20 : vector<2x128xf32>
    %c0_11 = arith.constant 0 : index
    %c512 = arith.constant 512 : index
    %23 = vector.load %arg3[%c0_11, %c512] : memref<2x1024xf32, #tpu.memory_space<vmem>>, vector<2x128xf32>
    %24 = arith.mulf %23, %23 : vector<2x128xf32>
    %25 = arith.maximumf %21, %24 : vector<2x128xf32>
    %26 = arith.addf %22, %24 : vector<2x128xf32>
    %c0_12 = arith.constant 0 : index
    %c640 = arith.constant 640 : index
    %27 = vector.load %arg3[%c0_12, %c640] : memref<2x1024xf32, #tpu.memory_space<vmem>>, vector<2x128xf32>
    %28 = arith.mulf %27, %27 : vector<2x128xf32>
    %29 = arith.maximumf %25, %28 : vector<2x128xf32>
    %30 = arith.addf %26, %28 : vector<2x128xf32>
    %c0_13 = arith.constant 0 : index
    %c768 = arith.constant 768 : index
    %31 = vector.load %arg3[%c0_13, %c768] : memref<2x1024xf32, #tpu.memory_space<vmem>>, vector<2x128xf32>
    %32 = arith.mulf %31, %31 : vector<2x128xf32>
    %33 = arith.maximumf %29, %32 : vector<2x128xf32>
    %34 = arith.addf %30, %32 : vector<2x128xf32>
    %c0_14 = arith.constant 0 : index
    %c896 = arith.constant 896 : index
    %35 = vector.load %arg3[%c0_14, %c896] : memref<2x1024xf32, #tpu.memory_space<vmem>>, vector<2x128xf32>
    %36 = arith.mulf %35, %35 : vector<2x128xf32>
    %37 = arith.maximumf %33, %36 : vector<2x128xf32>
    %38 = arith.addf %34, %36 : vector<2x128xf32>
    %c0_15 = arith.constant 0 : index
    %c0_16 = arith.constant 0 : index
    %c0_17 = arith.constant 0 : index
    %39 = vector.load %arg5[%c0_15, %c0_16, %c0_17] : memref<1x2x128xf32, #tpu.memory_space<vmem>>, vector<1x2x128xf32>
    %40 = vector.shape_cast %39 : vector<1x2x128xf32> to vector<2x128xf32>
    %41 = vector.shape_cast %37 : vector<2x128xf32> to vector<1x2x128xf32>
    tpu.vector_store %arg5[%c0_15, %c0_16, %c0_17], %41 {strides = array<i32>} : memref<1x2x128xf32, #tpu.memory_space<vmem>>, vector<1x2x128xf32>,
    %c0_18 = arith.constant 0 : index
    %c0_19 = arith.constant 0 : index
    %c0_20 = arith.constant 0 : index
    %42 = vector.load %arg6[%c0_18, %c0_19, %c0_20] : memref<1x2x128xf32, #tpu.memory_space<vmem>>, vector<1x2x128xf32>
    %43 = vector.shape_cast %42 : vector<1x2x128xf32> to vector<2x128xf32>
    %44 = vector.shape_cast %38 : vector<2x128xf32> to vector<1x2x128xf32>
    tpu.vector_store %arg6[%c0_18, %c0_19, %c0_20], %44 {strides = array<i32>} : memref<1x2x128xf32, #tpu.memory_space<vmem>>, vector<1x2x128xf32>,
    %c0_21 = arith.constant 0 : index
    %c0_22 = arith.constant 0 : index
    %c0_23 = arith.constant 0 : index
    %45 = vector.load %arg7[%c0_21, %c0_22, %c0_23] : memref<1x2x128xf32, #tpu.memory_space<vmem>>, vector<1x2x128xf32>
    %46 = vector.shape_cast %45 : vector<1x2x128xf32> to vector<2x128xf32>
    %c0_24 = arith.constant 0 : index
    %c0_25 = arith.constant 0 : index
    %c0_26 = arith.constant 0 : index
    %47 = vector.load %arg8[%c0_24, %c0_25, %c0_26] : memref<1x2x128xf32, #tpu.memory_space<vmem>>, vector<1x2x128xf32>
    %48 = vector.shape_cast %47 : vector<1x2x128xf32> to vector<2x128xf32>
    %c0_27 = arith.constant 0 : index
    %c0_28 = arith.constant 0 : index
    %49 = vector.load %arg4[%c0_27, %c0_28] : memref<2x1024xf32, #tpu.memory_space<vmem>>, vector<2x128xf32>
    %50 = arith.mulf %49, %49 : vector<2x128xf32>
    %51 = arith.maximumf %46, %50 : vector<2x128xf32>
    %52 = arith.addf %48, %50 : vector<2x128xf32>
    %c0_29 = arith.constant 0 : index
    %c128_30 = arith.constant 128 : index
    %53 = vector.load %arg4[%c0_29, %c128_30] : memref<2x1024xf32, #tpu.memory_space<vmem>>, vector<2x128xf32>
    %54 = arith.mulf %53, %53 : vector<2x128xf32>
    %55 = arith.maximumf %51, %54 : vector<2x128xf32>
    %56 = arith.addf %52, %54 : vector<2x128xf32>
    %c0_31 = arith.constant 0 : index
    %c256_32 = arith.constant 256 : index
    %57 = vector.load %arg4[%c0_31, %c256_32] : memref<2x1024xf32, #tpu.memory_space<vmem>>, vector<2x128xf32>
    %58 = arith.mulf %57, %57 : vector<2x128xf32>
    %59 = arith.maximumf %55, %58 : vector<2x128xf32>
    %60 = arith.addf %56, %58 : vector<2x128xf32>
    %c0_33 = arith.constant 0 : index
    %c384_34 = arith.constant 384 : index
    %61 = vector.load %arg4[%c0_33, %c384_34] : memref<2x1024xf32, #tpu.memory_space<vmem>>, vector<2x128xf32>
    %62 = arith.mulf %61, %61 : vector<2x128xf32>
    %63 = arith.maximumf %59, %62 : vector<2x128xf32>
    %64 = arith.addf %60, %62 : vector<2x128xf32>
    %c0_35 = arith.constant 0 : index
    %c512_36 = arith.constant 512 : index
    %65 = vector.load %arg4[%c0_35, %c512_36] : memref<2x1024xf32, #tpu.memory_space<vmem>>, vector<2x128xf32>
    %66 = arith.mulf %65, %65 : vector<2x128xf32>
    %67 = arith.maximumf %63, %66 : vector<2x128xf32>
    %68 = arith.addf %64, %66 : vector<2x128xf32>
    %c0_37 = arith.constant 0 : index
    %c640_38 = arith.constant 640 : index
    %69 = vector.load %arg4[%c0_37, %c640_38] : memref<2x1024xf32, #tpu.memory_space<vmem>>, vector<2x128xf32>
    %70 = arith.mulf %69, %69 : vector<2x128xf32>
    %71 = arith.maximumf %67, %70 : vector<2x128xf32>
    %72 = arith.addf %68, %70 : vector<2x128xf32>
    %c0_39 = arith.constant 0 : index
    %c768_40 = arith.constant 768 : index
    %73 = vector.load %arg4[%c0_39, %c768_40] : memref<2x1024xf32, #tpu.memory_space<vmem>>, vector<2x128xf32>
    %74 = arith.mulf %73, %73 : vector<2x128xf32>
    %75 = arith.maximumf %71, %74 : vector<2x128xf32>
    %76 = arith.addf %72, %74 : vector<2x128xf32>
    %c0_41 = arith.constant 0 : index
    %c896_42 = arith.constant 896 : index
    %77 = vector.load %arg4[%c0_41, %c896_42] : memref<2x1024xf32, #tpu.memory_space<vmem>>, vector<2x128xf32>
    %78 = arith.mulf %77, %77 : vector<2x128xf32>
    %79 = arith.maximumf %75, %78 : vector<2x128xf32>
    %80 = arith.addf %76, %78 : vector<2x128xf32>
    %c0_43 = arith.constant 0 : index
    %c0_44 = arith.constant 0 : index
    %c0_45 = arith.constant 0 : index
    %81 = vector.load %arg7[%c0_43, %c0_44, %c0_45] : memref<1x2x128xf32, #tpu.memory_space<vmem>>, vector<1x2x128xf32>
    %82 = vector.shape_cast %81 : vector<1x2x128xf32> to vector<2x128xf32>
    %83 = vector.shape_cast %79 : vector<2x128xf32> to vector<1x2x128xf32>
    tpu.vector_store %arg7[%c0_43, %c0_44, %c0_45], %83 {strides = array<i32>} : memref<1x2x128xf32, #tpu.memory_space<vmem>>, vector<1x2x128xf32>,
    %c0_46 = arith.constant 0 : index
    %c0_47 = arith.constant 0 : index
    %c0_48 = arith.constant 0 : index
    %84 = vector.load %arg8[%c0_46, %c0_47, %c0_48] : memref<1x2x128xf32, #tpu.memory_space<vmem>>, vector<1x2x128xf32>
    %85 = vector.shape_cast %84 : vector<1x2x128xf32> to vector<2x128xf32>
    %86 = vector.shape_cast %80 : vector<2x128xf32> to vector<1x2x128xf32>
    tpu.vector_store %arg8[%c0_46, %c0_47, %c0_48], %86 {strides = array<i32>} : memref<1x2x128xf32, #tpu.memory_space<vmem>>, vector<1x2x128xf32>,
    return
  }
  func.func @transform_0(%arg0: i32, %arg1: i32, %arg2: i32) -> (i32, i32) {
    %c1_i32 = arith.constant 1 : i32
    %0 = arith.muli %arg0, %c1_i32 : i32
    %1 = arith.addi %0, %arg2 : i32
    %c0_i32 = arith.constant 0 : i32
    return %arg1, %1 : i32, i32
  }
  func.func @transform_1(%arg0: i32, %arg1: i32, %arg2: i32) -> (i32, i32) {
    %c1_i32 = arith.constant 1 : i32
    %0 = arith.muli %arg0, %c1_i32 : i32
    %1 = arith.addi %0, %arg2 : i32
    %c0_i32 = arith.constant 0 : i32
    return %arg1, %1 : i32, i32
  }
  func.func @transform_2(%arg0: i32, %arg1: i32, %arg2: i32) -> (i32, i32, i32) {
    %c0_i32 = arith.constant 0 : i32
    %c0_i32_0 = arith.constant 0 : i32
    return %arg0, %arg1, %c0_i32 : i32, i32, i32
  }
  func.func @transform_3(%arg0: i32, %arg1: i32, %arg2: i32) -> (i32, i32, i32) {
    %c0_i32 = arith.constant 0 : i32
    %c0_i32_0 = arith.constant 0 : i32
    return %arg0, %arg1, %c0_i32 : i32, i32, i32
  }
  func.func @transform_4(%arg0: i32, %arg1: i32, %arg2: i32) -> (i32, i32, i32) {
    %c0_i32 = arith.constant 0 : i32
    %c0_i32_0 = arith.constant 0 : i32
    return %arg0, %arg1, %c0_i32 : i32, i32, i32
  }
  func.func @transform_5(%arg0: i32, %arg1: i32, %arg2: i32) -> (i32, i32, i32) {
    %c0_i32 = arith.constant 0 : i32
    %c0_i32_0 = arith.constant 0 : i32
    return %arg0, %arg1, %c0_i32 : i32, i32, i32
  }
}

</mosaic_0001>

<bundles_post_ra>
// kernel: _crest_factor_error_impl.1
= control target key start
LH: loop header
LB: loop body
LE: loop exit
PB: predicated region body
PF: predicated region fallthrough
CT: control target
= control target key end

     0   :  { %11 = vsyncpa [#allocation3], 0  ;;  %s293_s0 = inlined_call_operand.hbm [shape: f32[2,1024], index: 0, kind: input, shape index: {}]   ;;  %s294_s1 = inlined_call_operand.hbm [shape: f32[2,1024], index: 1, kind: input, shape index: {}]   ;;  %s295_s2 = inlined_call_operand.vmem [shape: f32[1,2,128], index: 2, kind: output, shape index: {0}]   ;;  %s296_s3 = inlined_call_operand.vmem [shape: f32[1,2,128], index: 3, kind: output, shape index: {1}]   ;;  %s297_s4 = inlined_call_operand.vmem [shape: f32[1,2,128], index: 4, kind: output, shape index: {2}]   ;;  %s298_s5 = inlined_call_operand.vmem [shape: f32[1,2,128], index: 5, kind: output, shape index: {3}]  }
   0x1   :  { %12 = vsyncpa [#allocation5], 0  ;;  %s200_s18 = smov [#allocation2]   ;;  %s201_s20 = smov [#allocation4]  }
   0x2   :  { %s23_s19 = sshll.u32 %s200_s18, 4  ;;  %s37_s21 = sshll.u32 %s201_s20, 4  ;;  %s24_s19 = int_to_ptr.vmem [resolvable:$true] %s23_s19  ;;  %s38_s21 = int_to_ptr.vmem [resolvable:$true] %s37_s21 }
   0x3   :  { %s152_s24 = scalar_lea.hbm %s293_s0, 256 }
   0x4   :  { %p153_p0 = scmp.ne.s32.totalorder %s293_s0, %s152_s24  ;;  %p156_p1 = scmp.lt.u32.totalorder %s152_s24, %s293_s0 }
   0x6   :  { %p158_p2 = pnand %p156_p1, %p153_p0 }
   0x8   :  { %161 = shalt.err (!%p158_p2)
}
   0x9   :  { %s162_s29 = scalar_lea.vmem %s24_s19, 256  ;;  %p167_p4 = scmp.lt.s32.totalorder %s24_s19, %s24_s19 }
   0xa   :  { %p163_p3 = scmp.ne.s32.totalorder %s24_s19, %s162_s29  ;;  %p168_p5 = scmp.lt.s32.totalorder %s162_s29, %s162_s29 }
   0xc   :  { %p169_p6 = por %p168_p5, %p167_p4 }
   0xe   :  { %p170_p7 = pnand %p169_p6, %p163_p3 }
  0x10   :  { %173 = shalt.err (!%p170_p7)
}
  0x11   :  { %26 = dma.hbm_to_vmem [thread:$0]  %s293_s0, 256, %s24_s19, [#allocation3]  }
  0x12   :  { %s174_s9 = scalar_lea.hbm %s294_s1, 256 }
  0x13   :  { %p175_p8 = scmp.ne.s32.totalorder %s294_s1, %s174_s9  ;;  %p178_p9 = scmp.lt.u32.totalorder %s174_s9, %s294_s1 }
  0x15   :  { %p180_p10 = pnand %p178_p9, %p175_p8 }
  0x17   :  { %183 = shalt.err (!%p180_p10)
}
  0x18   :  { %s184_s14 = scalar_lea.vmem %s38_s21, 256  ;;  %p189_p12 = scmp.lt.s32.totalorder %s38_s21, %s38_s21 }
  0x19   :  { %p185_p11 = scmp.ne.s32.totalorder %s38_s21, %s184_s14  ;;  %p190_p13 = scmp.lt.s32.totalorder %s184_s14, %s184_s14 }
  0x1b   :  { %p191_p0 = por %p190_p13, %p189_p12 }
  0x1d   :  { %p192_p1 = pnand %p191_p0, %p185_p11 }
  0x1f   :  { %195 = shalt.err (!%p192_p1)
}
  0x20   :  { %40 = dma.hbm_to_vmem [thread:$0]  %s294_s1, 256, %s38_s21, [#allocation5]  }
  0x21   :  { %196 = dma.done.wait [#allocation3], 256  }
  0x22   :  { %197 = vsyncadd [#allocation3], 4294967040 }
  0x23   :  { %198 = dma.done.wait [#allocation5], 256  }
  0x24   :  { %199 = vsyncadd [#allocation5], 4294967040  ;;  %v202_v0 = vmov 0.0   ;;  %v61_v1 = vld [vmem:[#allocation2] sm:$0x3] }
  0x25   :  { %55 = vst [vmem:[%s295_s2] sm:$0x3] %v202_v0  ;;  %56 = vst [vmem:[%s296_s3] sm:$0x3] %v202_v0  ;;  %v65_v2 = vld [vmem:[#allocation2 + $0x2] sm:$0x3]  ;;  %v69_v3 = vld [vmem:[#allocation2 + $0x4] sm:$0x3]  ;;  %v62_v5 = vmul.f32 %v61_v1, %v61_v1 }
  0x26   :  { %57 = vst [vmem:[%s297_s4] sm:$0x3] %v202_v0  ;;  %58 = vst [vmem:[%s298_s5] sm:$0x3] %v202_v0  ;;  %v66_v6 = vmul.f32 %v65_v2, %v65_v2  ;;  %v73_v7 = vld [vmem:[#allocation2 + $0x6] sm:$0x3]  ;;  %v70_v9 = vmul.f32 %v69_v3, %v69_v3  ;;  %v97_v12 = vld [vmem:[#allocation4] sm:$0x3] }
  0x27   :  { %v77_v13 = vld [vmem:[#allocation2 + $0x8] sm:$0x3]  ;;  %v98_v15 = vmul.f32 %v97_v12, %v97_v12  ;;  %v101_v16 = vld [vmem:[#allocation4 + $0x2] sm:$0x3]  ;;  %v105_v17 = vld [vmem:[#allocation4 + $0x4] sm:$0x3]  ;;  %v74_v19 = vmul.f32 %v73_v7, %v73_v7 }
  0x28   :  { %v102_v20 = vmul.f32 %v101_v16, %v101_v16  ;;  %v109_v21 = vld [vmem:[#allocation4 + $0x6] sm:$0x3]  ;;  %v81_v22 = vld [vmem:[#allocation2 + $0xa] sm:$0x3]  ;;  %v106_v25 = vmul.f32 %v105_v17, %v105_v17  ;;  %v78_v28 = vmul.f32 %v77_v13, %v77_v13  ;;  %v113_v29 = vld [vmem:[#allocation4 + $0x8] sm:$0x3] }
  0x29   :  { %v85_v31 = vld [vmem:[#allocation2 + $0xc] sm:$0x3]  ;;  %v110_v34 = vmul.f32 %v109_v21, %v109_v21  ;;  %v82_v36 = vmul.f32 %v81_v22, %v81_v22  ;;  %v117_v37 = vld [vmem:[#allocation4 + $0xa] sm:$0x3]  ;;  %v89_v39 = vld [vmem:[#allocation2 + $0xe] sm:$0x3]  ;;  %v114_v42 = vmul.f32 %v113_v29, %v113_v29 }
  0x2a   :  { %v86_v44 = vmul.f32 %v85_v31, %v85_v31  ;;  %v121_v45 = vld [vmem:[#allocation4 + $0xc] sm:$0x3]  ;;  %v118_v49 = vmul.f32 %v117_v37, %v117_v37  ;;  %v90_v51 = vmul.f32 %v89_v39, %v89_v39  ;;  %v125_v52 = vld [vmem:[#allocation4 + $0xe] sm:$0x3] }
  0x2b   :  { %v122_v56 = vmul.f32 %v121_v45, %v121_v45  ;;  %v126_v61 = vmul.f32 %v125_v52, %v125_v52 }
  0x2c   :  { %v59_v4 = vld [vmem:[%s295_s2] sm:$0x3] }
  0x2d   :  { %v63_v8 = vmax.f32 %v59_v4, %v62_v5  ;;  %v60_v10 = vld [vmem:[%s296_s3] sm:$0x3] }
  0x2e   :  { %v95_v11 = vld [vmem:[%s297_s4] sm:$0x3]  ;;  %v64_v14 = vadd.f32 %v62_v5, %v60_v10 }
  0x2f   :  { %v67_v18 = vmax.f32 %v63_v8, %v66_v6  ;;  %v99_v24 = vmax.f32 %v95_v11, %v98_v15  ;;  %v96_v26 = vld [vmem:[%s298_s5] sm:$0x3] }
  0x30   :  { %v68_v23 = vadd.f32 %v66_v6, %v64_v14  ;;  %v100_v30 = vadd.f32 %v98_v15, %v96_v26 }
  0x31   :  { %v71_v27 = vmax.f32 %v67_v18, %v70_v9  ;;  %v103_v33 = vmax.f32 %v99_v24, %v102_v20 }
  0x32   :  { %v72_v32 = vadd.f32 %v70_v9, %v68_v23  ;;  %v104_v38 = vadd.f32 %v102_v20, %v100_v30 }
  0x33   :  { %v75_v35 = vmax.f32 %v71_v27, %v74_v19  ;;  %v107_v41 = vmax.f32 %v103_v33, %v106_v25 }
  0x34   :  { %v76_v40 = vadd.f32 %v74_v19, %v72_v32  ;;  %v108_v46 = vadd.f32 %v106_v25, %v104_v38 }
  0x35   :  { %v79_v43 = vmax.f32 %v75_v35, %v78_v28  ;;  %v111_v48 = vmax.f32 %v107_v41, %v110_v34 }
  0x36   :  { %v80_v47 = vadd.f32 %v78_v28, %v76_v40  ;;  %v112_v53 = vadd.f32 %v110_v34, %v108_v46 }
  0x37   :  { %v83_v50 = vmax.f32 %v79_v43, %v82_v36  ;;  %v115_v55 = vmax.f32 %v111_v48, %v114_v42 }
  0x38   :  { %v84_v54 = vadd.f32 %v82_v36, %v80_v47  ;;  %v116_v58 = vadd.f32 %v114_v42, %v112_v53 }
  0x39   :  { %v87_v57 = vmax.f32 %v83_v50, %v86_v44  ;;  %v119_v60 = vmax.f32 %v115_v55, %v118_v49 }
  0x3a   :  { %v88_v59 = vadd.f32 %v86_v44, %v84_v54  ;;  %v120_v63 = vadd.f32 %v118_v49, %v116_v58 }
  0x3b   :  { %v91_v62 = vmax.f32 %v87_v57, %v90_v51  ;;  %v123_v1 = vmax.f32 %v119_v60, %v122_v56 }
  0x3c   :  { %v92_v0 = vadd.f32 %v90_v51, %v88_v59  ;;  %v124_v2 = vadd.f32 %v122_v56, %v120_v63 }
  0x3d   :  { %93 = vst [vmem:[%s295_s2] sm:$0x3] %v91_v62  ;;  %v127_v3 = vmax.f32 %v123_v1, %v126_v61 }
  0x3e   :  { %94 = vst [vmem:[%s296_s3] sm:$0x3] %v92_v0  ;;  %v128_v4 = vadd.f32 %v126_v61, %v124_v2 }
  0x3f   :  { %129 = vst [vmem:[%s297_s4] sm:$0x3] %v127_v3 }
  0x40   :  { %130 = vst [vmem:[%s298_s5] sm:$0x3] %v128_v4 }
  0x41   :  { %147 = vsyncpa [#allocation3], 1 }
  0x42   :  { %148 = vsyncpa [#allocation5], 1 }

</bundles_post_ra>
